<compile_context>
chip_gen: v6e
topology: v6e:2x2x1
jax: 0.10.0
libtpu: 0.0.40
codegen_flags: <defaults>
</compile_context>

<pallas_src>
import jax
import jax.numpy as jnp
from jax import lax
from jax.experimental import pallas as pl
from jax.experimental.pallas import tpu as pltpu

_VMEM = pltpu.MemorySpace.VMEM


def _linear_relu(x, w, b):
    # x: (B, in), w: (in, out) (pre-transposed), b: (1, out)
    y = jnp.dot(x, w, preferred_element_type=jnp.float32) + b
    return jnp.maximum(y, 0.0)


# ----------------------------- single step ---------------------------------

def rnn2_step_kernel(x_ref, h_ref, w1_ref, b1_ref, w2_ref, b2_ref,
                     out_ref, hid_ref):
    h_new = _linear_relu(x_ref[...], w1_ref[...], b1_ref[...]) + h_ref[...]
    out = _linear_relu(h_new, w2_ref[...], b2_ref[...])
    out_ref[...] = out.astype(out_ref.dtype)
    hid_ref[...] = h_new.astype(hid_ref.dtype)


# --------------------------- full sequence ----------------------------------
# One pallas_call for T timesteps: weights resident, hidden carry in vregs.

def rnn2_seq_kernel(xs_ref, h0_ref, w1_ref, b1_ref, w2_ref, b2_ref,
                    outs_ref, hfin_ref):
    w1 = w1_ref[...]
    b1 = b1_ref[...]
    w2 = w2_ref[...]
    b2 = b2_ref[...]

    T = xs_ref.shape[0]

    def step(t, h):
        h_new = _linear_relu(xs_ref[t], w1, b1) + h
        o = _linear_relu(h_new, w2, b2)
        outs_ref[t] = o.astype(outs_ref.dtype)
        return h_new

    h = h0_ref[...].astype(jnp.float32)
    if T <= 16:
        # Short, static trip count: unroll with static indices so the
        # hidden carry never leaves vector registers.
        for t in range(T):
            h = step(t, h)
    else:
        h = lax.fori_loop(0, T, step, h, unroll=False)

    hfin_ref[...] = h.astype(hfin_ref.dtype)


# ------------------------------ wrappers -------------------------------------

def rnn2_prepare_params(w_i2h, b_i2h, w_h2o, b_h2o, dtype=jnp.float32):
    """One-time conversion out of PyTorch Linear layout (call at init)."""
    return {
        "w1": jnp.asarray(w_i2h, dtype).T,               # (in,  hid)
        "b1": jnp.asarray(b_i2h, dtype).reshape(1, -1),  # (1,   hid)
        "w2": jnp.asarray(w_h2o, dtype).T,               # (hid, out)
        "b2": jnp.asarray(b_h2o, dtype).reshape(1, -1),  # (1,   out)
    }


@jax.jit
def rnn2_step(params, x, hidden):
    """Single RNN2 step (matches the PyTorch forward exactly)."""
    B = x.shape[0]
    hid = params["w1"].shape[1]
    out = params["w2"].shape[1]
    return pl.pallas_call(
        rnn2_step_kernel,
        out_shape=(
            jax.ShapeDtypeStruct((B, out), jnp.float32),
            jax.ShapeDtypeStruct((B, hid), jnp.float32),
        ),
        in_specs=[pl.BlockSpec(memory_space=_VMEM)] * 6,
        out_specs=(
            pl.BlockSpec(memory_space=_VMEM),
            pl.BlockSpec(memory_space=_VMEM),
        ),
    )(x, hidden, params["w1"], params["b1"], params["w2"], params["b2"])


@jax.jit
def rnn2_sequence(params, xs, h0):
    """Run T timesteps in ONE pallas_call (weights resident in VMEM)."""
    T, B, _ = xs.shape
    hid = params["w1"].shape[1]
    out = params["w2"].shape[1]
    return pl.pallas_call(
        rnn2_seq_kernel,
        out_shape=(
            jax.ShapeDtypeStruct((T, B, out), jnp.float32),
            jax.ShapeDtypeStruct((B, hid), jnp.float32),
        ),
        in_specs=[pl.BlockSpec(memory_space=_VMEM)] * 6,
        out_specs=(
            pl.BlockSpec(memory_space=_VMEM),
            pl.BlockSpec(memory_space=_VMEM),
        ),
    )(xs, h0, params["w1"], params["b1"], params["w2"], params["b2"])


# ------------------------------ references -----------------------------------

def rnn2_reference_step(x, h, w_i2h, b_i2h, w_h2o, b_h2o):
    h_new = jnp.maximum(x @ w_i2h.T + b_i2h, 0.0) + h
    o = jnp.maximum(h_new @ w_h2o.T + b_h2o, 0.0)
    return o, h_new


def rnn2_reference_seq(xs, h0, w_i2h, b_i2h, w_h2o, b_h2o):
    h = h0
    outs = []
    for t in range(xs.shape[0]):
        o, h = rnn2_reference_step(xs[t], h, w_i2h, b_i2h, w_h2o, b_h2o)
        outs.append(o)
    return jnp.stack(outs, axis=0), h


if __name__ == "__main__":
    # Module defaults: input_size=16, hidden_size=128, output_size=1
    B, INPUT, HIDDEN, OUTPUT, T = 2, 16, 128, 1, 8

    key = jax.random.PRNGKey(0)
    k_x, k_xs, k_h, k_w1, k_b1, k_w2, k_b2 = jax.random.split(key, 7)

    x = jax.random.normal(k_x, (B, INPUT), jnp.float32)
    xs = jax.random.normal(k_xs, (T, B, INPUT), jnp.float32)
    h0 = jax.random.normal(k_h, (B, HIDDEN), jnp.float32)

    # Deterministic params in PyTorch Linear layout.
    w_i2h = jax.random.normal(k_w1, (HIDDEN, INPUT), jnp.float32) * 0.1
    b_i2h = jax.random.normal(k_b1, (HIDDEN,), jnp.float32) * 0.1
    w_h2o = jax.random.normal(k_w2, (OUTPUT, HIDDEN), jnp.float32) * 0.1
    b_h2o = jax.random.normal(k_b2, (OUTPUT,), jnp.float32) * 0.1

    # Pure-jnp references.
    out_ref, hid_ref = rnn2_reference_step(x, h0, w_i2h, b_i2h, w_h2o, b_h2o)
    outs_ref, hfin_ref = rnn2_reference_seq(xs, h0, w_i2h, b_i2h, w_h2o, b_h2o)

    # One-time parameter prep (transpose / reshape / cast hoisted here).
    params = rnn2_prepare_params(w_i2h, b_i2h, w_h2o, b_h2o)

    out, hid = rnn2_step(params, x, h0)
    outs, hfin = rnn2_sequence(params, xs, h0)
    jax.block_until_ready((out, hid, outs, hfin))

    assert out.shape == (B, OUTPUT) and hid.shape == (B, HIDDEN)
    assert outs.shape == (T, B, OUTPUT) and hfin.shape == (B, HIDDEN)
    assert jnp.allclose(out, out_ref, atol=1e-5, rtol=1e-5)
    assert jnp.allclose(hid, hid_ref, atol=1e-5, rtol=1e-5)
    assert jnp.allclose(outs, outs_ref, atol=1e-4, rtol=1e-4)
    assert jnp.allclose(hfin, hfin_ref, atol=1e-4, rtol=1e-4)

    print("KERNEL_OK")
</pallas_src>

<mosaic_0001>
module attributes {stable_mosaic.version = 11 : i64} {
  func.func @rnn2_step_kernel(%arg0: memref<2x16xf32, #tpu.memory_space<vmem>>, %arg1: memref<2x128xf32, #tpu.memory_space<vmem>>, %arg2: memref<16x128xf32, #tpu.memory_space<vmem>>, %arg3: memref<1x128xf32, #tpu.memory_space<vmem>>, %arg4: memref<128x1xf32, #tpu.memory_space<vmem>>, %arg5: memref<1x1xf32, #tpu.memory_space<vmem>>, %arg6: memref<2x1xf32, #tpu.memory_space<vmem>>, %arg7: memref<2x128xf32, #tpu.memory_space<vmem>>) attributes {dimension_semantics = [], scalar_prefetch = 0 : i64, scratch_operands = 0 : i64, tpu.core_type = #tpu.core_type<tc>} {
    %c0 = arith.constant 0 : index
    %c0_0 = arith.constant 0 : index
    %0 = vector.load %arg0[%c0, %c0_0] : memref<2x16xf32, #tpu.memory_space<vmem>>, vector<2x16xf32>
    %c0_1 = arith.constant 0 : index
    %c0_2 = arith.constant 0 : index
    %1 = vector.load %arg2[%c0_1, %c0_2] : memref<16x128xf32, #tpu.memory_space<vmem>>, vector<16x128xf32>
    %c0_3 = arith.constant 0 : index
    %c0_4 = arith.constant 0 : index
    %2 = vector.load %arg3[%c0_3, %c0_4] : memref<1x128xf32, #tpu.memory_space<vmem>>, vector<1x128xf32>
    %cst = arith.constant dense<0.000000e+00> : vector<2x128xf32>
    %3 = tpu.matmul %0, %1, %cst {dimension_numbers = #tpu.dot_dimension_numbers<[1], [0], [0], [1], [0, 0, 1, 1], [], []>} : vector<2x16xf32>, vector<16x128xf32>, vector<2x128xf32> -> vector<2x128xf32>
    %4 = vector.broadcast %2 : vector<1x128xf32> to vector<2x128xf32>
    %5 = arith.addf %3, %4 : vector<2x128xf32>
    %cst_5 = arith.constant 0.000000e+00 : f32
    %6 = vector.broadcast %cst_5 : f32 to vector<2x128xf32>
    %7 = arith.maximumf %5, %6 : vector<2x128xf32>
    %c0_6 = arith.constant 0 : index
    %c0_7 = arith.constant 0 : index
    %8 = vector.load %arg1[%c0_6, %c0_7] : memref<2x128xf32, #tpu.memory_space<vmem>>, vector<2x128xf32>
    %9 = arith.addf %7, %8 : vector<2x128xf32>
    %c0_8 = arith.constant 0 : index
    %c0_9 = arith.constant 0 : index
    %10 = vector.load %arg4[%c0_8, %c0_9] : memref<128x1xf32, #tpu.memory_space<vmem>>, vector<128x1xf32>
    %c0_10 = arith.constant 0 : index
    %c0_11 = arith.constant 0 : index
    %11 = vector.load %arg5[%c0_10, %c0_11] : memref<1x1xf32, #tpu.memory_space<vmem>>, vector<1x1xf32>
    %cst_12 = arith.constant dense<0.000000e+00> : vector<2x1xf32>
    %12 = tpu.matmul %9, %10, %cst_12 {dimension_numbers = #tpu.dot_dimension_numbers<[1], [0], [0], [1], [0, 0, 1, 1], [], []>} : vector<2x128xf32>, vector<128x1xf32>, vector<2x1xf32> -> vector<2x1xf32>
    %13 = vector.broadcast %11 : vector<1x1xf32> to vector<2x1xf32>
    %14 = arith.addf %12, %13 : vector<2x1xf32>
    %cst_13 = arith.constant 0.000000e+00 : f32
    %15 = vector.broadcast %cst_13 : f32 to vector<2x1xf32>
    %16 = arith.maximumf %14, %15 : vector<2x1xf32>
    %c0_14 = arith.constant 0 : index
    %c0_15 = arith.constant 0 : index
    %17 = vector.load %arg6[%c0_14, %c0_15] : memref<2x1xf32, #tpu.memory_space<vmem>>, vector<2x1xf32>
    tpu.vector_store %arg6[%c0_14, %c0_15], %16 {strides = array<i32>} : memref<2x1xf32, #tpu.memory_space<vmem>>, vector<2x1xf32>,
    %c0_16 = arith.constant 0 : index
    %c0_17 = arith.constant 0 : index
    %18 = vector.load %arg7[%c0_16, %c0_17] : memref<2x128xf32, #tpu.memory_space<vmem>>, vector<2x128xf32>
    tpu.vector_store %arg7[%c0_16, %c0_17], %9 {strides = array<i32>} : memref<2x128xf32, #tpu.memory_space<vmem>>, vector<2x128xf32>,
    return
  }
}

</mosaic_0001>

<bundles_post_ra>
// kernel: rnn2_step.1
= control target key start
LH: loop header
LB: loop body
LE: loop exit
PB: predicated region body
PF: predicated region fallthrough
CT: control target
= control target key end

     0   :  { %s437_s0 = inlined_call_operand.vmem [shape: f32[2,16], index: 0, kind: input, shape index: {}]   ;;  %s438_s1 = inlined_call_operand.vmem [shape: f32[2,128], index: 1, kind: input, shape index: {}]   ;;  %s439_s2 = inlined_call_operand.vmem [shape: f32[16,128], index: 2, kind: input, shape index: {}]   ;;  %s440_s3 = inlined_call_operand.vmem [shape: f32[1,128], index: 3, kind: input, shape index: {}]   ;;  %s441_s4 = inlined_call_operand.vmem [shape: f32[128,1], index: 4, kind: input, shape index: {}]   ;;  %s442_s5 = inlined_call_operand.<no memory space> [shape: f32[1,1], index: 5, kind: input, shape index: {}]   ;;  %s443_s6 = inlined_call_operand.vmem [shape: f32[2,1], index: 6, kind: output, shape index: {0}]   ;;  %s444_s7 = inlined_call_operand.hbm [shape: f32[2,128], index: 7, kind: output, shape index: {1}]  }
   0x1   :  { %v13_v0 = vstv %s442_s5 }
   0x2   :  { %14 = vst [vmem:[#allocation2] sm:$0x1] %v13_v0 }
   0x3   :  { %v30_v1 = vld [vmem:[%s439_s2 + $0x8] sm:$0xff]  ;;  %v320_v2 = vmov 0.0   ;;  %v29_v3 = vld [vmem:[%s439_s2] sm:$0xff]  ;;  %vm321_vm0 = vmmov 0   ;;  %v130_v4 = vld [vmem:[%s441_s4 + $0x78] sm:$0xff]  ;;  %vm38_vm1 = vcmask 130048  }
   0x4   :  { %253 = vmatprep.subr.mxu0 %v320_v2  ;;  %257 = vmatprep.mubr.msk.f32.mxu0 %vm321_vm0, %v320_v2  ;;  %v28_v5 = vld [vmem:[%s437_s0] sm:$0x3]  ;;  %v129_v6 = vld [vmem:[%s441_s4 + $0x70] sm:$0xff]  ;;  %v128_v7 = vld [vmem:[%s441_s4 + $0x68] sm:$0xff] }
   0x5   :  { %254 = vmatpush3.msra.mxu0 %v30_v1  ;;  %260 = vmatprep.subr.mxu1 %v320_v2 }
   0x6   :  { %255 = vmatprep.subr.mxu0 %v320_v2  ;;  %261 = vmatpush3.msra.mxu1 %v130_v4 }
   0x7   :  { %256 = vmatpush3.msra.mxu0 %v29_v3  ;;  %262 = vmatprep.subr.mxu1 %v320_v2 }
   0x8   :  { %258 = vmatmul.mubr.msk.f32.vlgmr.msra.gmra.mxu0 %vm38_vm1, %v28_v5  ;;  %263 = vmatpush3.msra.mxu1 %v129_v6 }
   0x9   :  { %15 = vsyncpa [#allocation4], 0  ;;  %264 = vmatprep.subr.mxu1 %v320_v2  ;;  %v127_v8 = vld [vmem:[%s441_s4 + $0x60] sm:$0xff]  ;;  %292 = vmatprep.mubr.msk.f32.mxu1 %vm321_vm0, %v320_v2  ;;  %v126_v9 = vld [vmem:[%s441_s4 + $0x58] sm:$0xff]  ;;  %s322_s16 = smov [#allocation3]  }
   0xa   :  { %265 = vmatpush3.msra.mxu1 %v128_v7  ;;  %v125_v10 = vld [vmem:[%s441_s4 + $0x50] sm:$0xff]  ;;  %v124_v11 = vld [vmem:[%s441_s4 + $0x48] sm:$0xff]  ;;  %v123_v12 = vld [vmem:[%s441_s4 + $0x40] sm:$0xff]  ;;  %s220_s17 = sshll.u32 %s322_s16, 4  ;;  %s221_s17 = int_to_ptr.vmem [resolvable:$true] %s220_s17 }
   0xb   :  { %266 = vmatprep.subr.mxu1 %v320_v2  ;;  %v122_v13 = vld [vmem:[%s441_s4 + $0x38] sm:$0xff]  ;;  %v121_v14 = vld [vmem:[%s441_s4 + $0x30] sm:$0xff]  ;;  %v120_v15 = vld [vmem:[%s441_s4 + $0x28] sm:$0xff]  ;;  %p303_p1 = scmp.lt.s32.totalorder %s221_s17, %s221_s17 }
   0xc   :  { %267 = vmatpush3.msra.mxu1 %v127_v8  ;;  %v119_v16 = vld [vmem:[%s441_s4 + $0x20] sm:$0xff]  ;;  %v118_v17 = vld [vmem:[%s441_s4 + $0x18] sm:$0xff]  ;;  %v117_v18 = vld [vmem:[%s441_s4 + $0x10] sm:$0xff] }
   0xd   :  { %268 = vmatprep.subr.mxu1 %v320_v2  ;;  %v116_v19 = vld [vmem:[%s441_s4 + $0x8] sm:$0xff]  ;;  %v115_v20 = vld [vmem:[%s441_s4] sm:$0xff]  ;;  %s298_s4 = scalar_lea.vmem %s221_s17, 32 }
   0xe   :  { %269 = vmatpush3.msra.mxu1 %v126_v9  ;;  %v230_v21 = vld [vmem:[%s440_s3] ss:$0 sm:$0xff]  ;;  %p299_p0 = scmp.ne.s32.totalorder %s221_s17, %s298_s4  ;;  %p304_p2 = scmp.lt.s32.totalorder %s298_s4, %s298_s4 }
   0xf   :  { %270 = vmatprep.subr.mxu1 %v320_v2  ;;  %v113_v24 = vld [vmem:[%s438_s1] sm:$0x3] }
  0x10   :  { %271 = vmatpush3.msra.mxu1 %v125_v10  ;;  %p305_p3 = por %p304_p2, %p303_p1 }
  0x11   :  { %272 = vmatprep.subr.mxu1 %v320_v2 }
  0x12   :  { %273 = vmatpush3.msra.mxu1 %v124_v11  ;;  %p306_p4 = pnand %p305_p3, %p299_p0 }
  0x13   :  { %274 = vmatprep.subr.mxu1 %v320_v2 }
  0x14   :  { %275 = vmatpush3.msra.mxu1 %v123_v12 }
  0x15   :  { %276 = vmatprep.subr.mxu1 %v320_v2 }
  0x16   :  { %277 = vmatpush3.msra.mxu1 %v122_v13 }
  0x17   :  { %278 = vmatprep.subr.mxu1 %v320_v2 }
  0x18   :  { %279 = vmatpush3.msra.mxu1 %v121_v14 }
  0x19   :  { %280 = vmatprep.subr.mxu1 %v320_v2 }
  0x1a   :  { %281 = vmatpush3.msra.mxu1 %v120_v15 }
  0x1b   :  { %282 = vmatprep.subr.mxu1 %v320_v2 }
  0x1c   :  { %283 = vmatpush3.msra.mxu1 %v119_v16 }
  0x1d   :  { %284 = vmatprep.subr.mxu1 %v320_v2 }
  0x1e   :  { %285 = vmatpush3.msra.mxu1 %v118_v17 }
  0x1f   :  { %286 = vmatprep.subr.mxu1 %v320_v2 }
  0x20   :  { %287 = vmatpush3.msra.mxu1 %v117_v18 }
  0x21   :  { %288 = vmatprep.subr.mxu1 %v320_v2 }
  0x22   :  { %289 = vmatpush3.msra.mxu1 %v116_v19 }
  0x23   :  { %290 = vmatprep.subr.mxu1 %v320_v2 }
  0x24   :  { %291 = vmatpush3.msra.mxu1 %v115_v20 }
  0xc8   :  { %v108_v22 = vpop.f32.mrf.mxu0 }
  0xc9   :  { %v109_v23 = vadd.f32 %v230_v21, %v108_v22 }
  0xca   :  { %v259_v25 = vpop.f32.mrf.mxu0 }
  0xcb   :  { %v112_v26 = vmax.f32 %v109_v23, 0.0 }
  0xcd   :  { %v114_v27 = vadd.f32 %v113_v24, %v112_v26 }
  0xcf   :  { %211 = vst [vmem:[#allocation3] sm:$0x3] %v114_v27  ;;  %293 = vmatmul.mubr.f32.vlgmr.msra.gmra.mxu1 %v114_v27 }
  0xd0   :  { %309 = shalt.err (!%p306_p4)
}
  0xd1   :  { %223 = dma.vmem_to_hbm [thread:$0]  %s221_s17, 32, %s444_s7, [#allocation4]   ;;  %v232_v28 = vld [vmem:[#allocation2] ss:$0 sm:$0xff]  ;;  %vm209_vm2 = vcmask 1024  }
 0x18f   :  { %v204_v29 = vpop.f32.mrf.mxu1 }
 0x190   :  { %v205_v30 = vadd.f32 %v232_v28, %v204_v29 }
 0x191   :  { %v294_v31 = vpop.f32.mrf.mxu1 }
 0x192   :  { %v208_v32 = vmax.f32 %v205_v30, 0.0 }
 0x194   :  { %210 = vst.msk [vmem:[%s443_s6] sm:$0x3] %vm209_vm2, %v208_v32 }
 0x195   :  { %318 = dma.done.wait [#allocation4], 32  }
 0x196   :  { %319 = vsyncadd [#allocation4], 4294967264 }
 0x197   :  { %229 = vsyncpa [#allocation4], 1 }

</bundles_post_ra>
